<compile_context>
chip_gen: v7x
topology: tpu7x:2x2x1
jax: 0.10.0
libtpu: 0.0.40
codegen_flags: <defaults>
</compile_context>

<pallas_src>
from functools import partial

import jax
import jax.numpy as jnp
from jax.experimental import pallas as pl
from jax.experimental.pallas import tpu as pltpu


def _round_up(n: int, m: int) -> int:
    return ((n + m - 1) // m) * m


# ----------------------------------------------------------------------------
# Kernel: one batch tile (TB rows) through the whole 4-layer MLP.
# Weights are bf16 (MXU operands), biases f32, accumulation f32.
# ----------------------------------------------------------------------------
def actor_ppo_kernel(x_ref,
                     w1_ref, b1_ref,
                     w2_ref, b2_ref,
                     w3_ref, b3_ref,
                     w4_ref, b4_ref,
                     mu_ref):
    cd = w1_ref.dtype  # compute (operand) dtype, bf16

    h = x_ref[...]                                                       # (TB, S) bf16
    h = jnp.dot(h, w1_ref[...], preferred_element_type=jnp.float32) + b1_ref[...]
    h = jnp.maximum(h, 0.0).astype(cd)

    h = jnp.dot(h, w2_ref[...], preferred_element_type=jnp.float32) + b2_ref[...]
    h = jnp.maximum(h, 0.0).astype(cd)

    h = jnp.dot(h, w3_ref[...], preferred_element_type=jnp.float32) + b3_ref[...]
    h = jnp.maximum(h, 0.0).astype(cd)

    # Final layer: padded to a lane-dense 128-wide output slab (zeros in the
    # padded columns since w4/b4 were zero-padded).
    mu = jnp.dot(h, w4_ref[...], preferred_element_type=jnp.float32) + b4_ref[...]
    mu_ref[...] = mu.astype(mu_ref.dtype)                                # (TB, 128)


# ----------------------------------------------------------------------------
# One-time parameter preparation: bf16 cast, lane-dense padding of the output
# layer, and the batch-independent exp(action_var).
# ----------------------------------------------------------------------------
def prepare_params(params, compute_dtype=jnp.bfloat16):
    action_dim = params["w4"].shape[1]
    out_pad = _round_up(action_dim, 128)

    w4 = jnp.pad(params["w4"], ((0, 0), (0, out_pad - action_dim)))
    b4 = jnp.pad(params["b4"], ((0, 0), (0, out_pad - action_dim)))

    prepped = dict(
        w1=params["w1"].astype(compute_dtype), b1=params["b1"].astype(jnp.float32),
        w2=params["w2"].astype(compute_dtype), b2=params["b2"].astype(jnp.float32),
        w3=params["w3"].astype(compute_dtype), b3=params["b3"].astype(jnp.float32),
        w4=w4.astype(compute_dtype),           b4=b4.astype(jnp.float32),
        # batch-independent -> computed once here, never in the kernel
        var=jnp.exp(params["action_var"]).reshape(-1),
    )
    return prepped, action_dim


# ----------------------------------------------------------------------------
# Forward wrapper: tiles the batch over a 1-D grid, keeps weights resident.
# ----------------------------------------------------------------------------
@partial(jax.jit, static_argnames=("action_dim", "tb"))
def actor_ppo_forward(x, prepped, action_dim, tb=128):
    B, S = x.shape
    # Batch tile: multiple of 8 (sublane), capped so tiny batches stay 1 step.
    tb = min(tb, _round_up(B, 8))
    B_pad = _round_up(B, tb)
    if B_pad != B:
        x = jnp.pad(x, ((0, B_pad - B), (0, 0)))
    x = x.astype(prepped["w1"].dtype)

    out_pad = prepped["w4"].shape[1]          # 128-multiple, lane-dense
    grid = (B_pad // tb,)

    # Weights / biases: full-array blocks with constant index maps -> DMA'd
    # once, VMEM-resident across all batch tiles.
    def resident(a):
        return pl.BlockSpec(a.shape, lambda i: (0,) * a.ndim)

    mu_pad = pl.pallas_call(
        actor_ppo_kernel,
        out_shape=jax.ShapeDtypeStruct((B_pad, out_pad), jnp.float32),
        grid=grid,
        in_specs=[
            pl.BlockSpec((tb, S), lambda i: (i, 0)),          # x: tiled over batch
            resident(prepped["w1"]), resident(prepped["b1"]),
            resident(prepped["w2"]), resident(prepped["b2"]),
            resident(prepped["w3"]), resident(prepped["b3"]),
            resident(prepped["w4"]), resident(prepped["b4"]),
        ],
        out_specs=pl.BlockSpec((tb, out_pad), lambda i: (i, 0)),
        compiler_params=pltpu.CompilerParams(
            dimension_semantics=("parallel",),                # megacore on v7x
        ),
    )(
        x,
        prepped["w1"], prepped["b1"],
        prepped["w2"], prepped["b2"],
        prepped["w3"], prepped["b3"],
        prepped["w4"], prepped["b4"],
    )

    mu = mu_pad[:B, :action_dim]
    return mu, prepped["var"]


# ----------------------------------------------------------------------------
# Synthetic init matching the PyTorch module (Linear uniform init;
# action_var = full(action_dim, -action_std**2)).
# ----------------------------------------------------------------------------
def init_params(key, state_dim, mid_dim, action_dim):
    ks = jax.random.split(key, 8)

    def linear(kw, kb, fan_in, fan_out):
        bound = 1.0 / jnp.sqrt(fan_in)
        w = jax.random.uniform(kw, (fan_in, fan_out), jnp.float32, -bound, bound)
        b = jax.random.uniform(kb, (1, fan_out), jnp.float32, -bound, bound)
        return w, b

    w1, b1 = linear(ks[0], ks[1], state_dim, mid_dim)
    w2, b2 = linear(ks[2], ks[3], mid_dim, mid_dim)
    w3, b3 = linear(ks[4], ks[5], mid_dim, action_dim if False else mid_dim)
    w4, b4 = linear(ks[6], ks[7], mid_dim, action_dim)

    action_std = 0.5
    # NOTE: matches the original module exactly (it stores -std**2 and exps it).
    action_var = jnp.full((action_dim,), -action_std * action_std, jnp.float32)

    return dict(w1=w1, b1=b1, w2=w2, b2=b2, w3=w3, b3=b3, w4=w4, b4=b4,
                action_var=action_var)


if __name__ == "__main__":
    # Small shapes consistent with the module: batch=8, state_dim=16,
    # mid_dim=32, action_dim=4.
    B, state_dim, mid_dim, action_dim = 8, 16, 32, 4

    key = jax.random.PRNGKey(0)
    k_x, k_p = jax.random.split(key)

    x = jax.random.normal(k_x, (B, state_dim), jnp.float32)
    params = init_params(k_p, state_dim, mid_dim, action_dim)

    prepped, adim = prepare_params(params)
    mu, var = actor_ppo_forward(x, prepped, adim)
    jax.block_until_ready((mu, var))

    # Pure-JAX reference mimicking the kernel numerics (bf16 operands,
    # f32 accumulation) for a tight check.
    def ref(x, p, cd=jnp.bfloat16):
        h = x.astype(cd)
        h = jnp.maximum(jnp.dot(h, p["w1"].astype(cd),
                                preferred_element_type=jnp.float32) + p["b1"], 0.0).astype(cd)
        h = jnp.maximum(jnp.dot(h, p["w2"].astype(cd),
                                preferred_element_type=jnp.float32) + p["b2"], 0.0).astype(cd)
        h = jnp.maximum(jnp.dot(h, p["w3"].astype(cd),
                                preferred_element_type=jnp.float32) + p["b3"], 0.0).astype(cd)
        mu_r = jnp.dot(h, p["w4"].astype(cd),
                       preferred_element_type=jnp.float32) + p["b4"]
        return mu_r, jnp.exp(p["action_var"]).reshape(-1)

    mu_r, var_r = ref(x, params)
    assert mu.shape == (B, action_dim) and var.shape == (action_dim,)
    assert jnp.allclose(mu, mu_r, atol=1e-3, rtol=1e-3), "mu mismatch"
    assert jnp.allclose(var, var_r, atol=1e-6, rtol=1e-6), "var mismatch"

    print("KERNEL_OK")
</pallas_src>

<mosaic_0001>
module attributes {stable_mosaic.version = 11 : i64} {
  func.func @actor_ppo_kernel(%arg0: i32, %arg1: memref<8x16xbf16, #tpu.memory_space<vmem>>, %arg2: memref<16x32xbf16, #tpu.memory_space<vmem>>, %arg3: memref<1x32xf32, #tpu.memory_space<vmem>>, %arg4: memref<32x32xbf16, #tpu.memory_space<vmem>>, %arg5: memref<1x32xf32, #tpu.memory_space<vmem>>, %arg6: memref<32x32xbf16, #tpu.memory_space<vmem>>, %arg7: memref<1x32xf32, #tpu.memory_space<vmem>>, %arg8: memref<32x128xbf16, #tpu.memory_space<vmem>>, %arg9: memref<1x128xf32, #tpu.memory_space<vmem>>, %arg10: memref<8x128xf32, #tpu.memory_space<vmem>>) attributes {dimension_semantics = [#tpu.dimension_semantics<parallel>], iteration_bounds = array<i64: 1>, scalar_prefetch = 0 : i64, scratch_operands = 0 : i64, tpu.core_type = #tpu.core_type<tc>, window_params = [{transform_indices = @transform_0, window_bounds = array<i64: 8, 16>}, {pipeline_mode = #tpu.pipeline_mode<synchronous>, transform_indices = @transform_1, window_bounds = array<i64: 16, 32>}, {pipeline_mode = #tpu.pipeline_mode<synchronous>, transform_indices = @transform_2, window_bounds = array<i64: 1, 32>}, {pipeline_mode = #tpu.pipeline_mode<synchronous>, transform_indices = @transform_3, window_bounds = array<i64: 32, 32>}, {pipeline_mode = #tpu.pipeline_mode<synchronous>, transform_indices = @transform_4, window_bounds = array<i64: 1, 32>}, {pipeline_mode = #tpu.pipeline_mode<synchronous>, transform_indices = @transform_5, window_bounds = array<i64: 32, 32>}, {pipeline_mode = #tpu.pipeline_mode<synchronous>, transform_indices = @transform_6, window_bounds = array<i64: 1, 32>}, {pipeline_mode = #tpu.pipeline_mode<synchronous>, transform_indices = @transform_7, window_bounds = array<i64: 32, 128>}, {pipeline_mode = #tpu.pipeline_mode<synchronous>, transform_indices = @transform_8, window_bounds = array<i64: 1, 128>}, {transform_indices = @transform_9, window_bounds = array<i64: 8, 128>}]} {
    %c0 = arith.constant 0 : index
    %c0_0 = arith.constant 0 : index
    %0 = vector.load %arg1[%c0, %c0_0] : memref<8x16xbf16, #tpu.memory_space<vmem>>, vector<8x16xbf16>
    %c0_1 = arith.constant 0 : index
    %c0_2 = arith.constant 0 : index
    %1 = vector.load %arg2[%c0_1, %c0_2] : memref<16x32xbf16, #tpu.memory_space<vmem>>, vector<16x32xbf16>
    %cst = arith.constant dense<0.000000e+00> : vector<8x32xf32>
    %2 = tpu.matmul %0, %1, %cst {dimension_numbers = #tpu.dot_dimension_numbers<[1], [0], [0], [1], [0, 0, 1, 1], [], []>} : vector<8x16xbf16>, vector<16x32xbf16>, vector<8x32xf32> -> vector<8x32xf32>
    %c0_3 = arith.constant 0 : index
    %c0_4 = arith.constant 0 : index
    %3 = vector.load %arg3[%c0_3, %c0_4] : memref<1x32xf32, #tpu.memory_space<vmem>>, vector<1x32xf32>
    %4 = vector.broadcast %3 : vector<1x32xf32> to vector<8x32xf32>
    %5 = arith.addf %2, %4 : vector<8x32xf32>
    %cst_5 = arith.constant 0.000000e+00 : f32
    %6 = vector.broadcast %cst_5 : f32 to vector<8x32xf32>
    %7 = arith.maximumf %5, %6 : vector<8x32xf32>
    %8 = arith.truncf %7 : vector<8x32xf32> to vector<8x32xbf16>
    %c0_6 = arith.constant 0 : index
    %c0_7 = arith.constant 0 : index
    %9 = vector.load %arg4[%c0_6, %c0_7] : memref<32x32xbf16, #tpu.memory_space<vmem>>, vector<32x32xbf16>
    %cst_8 = arith.constant dense<0.000000e+00> : vector<8x32xf32>
    %10 = tpu.matmul %8, %9, %cst_8 {dimension_numbers = #tpu.dot_dimension_numbers<[1], [0], [0], [1], [0, 0, 1, 1], [], []>} : vector<8x32xbf16>, vector<32x32xbf16>, vector<8x32xf32> -> vector<8x32xf32>
    %c0_9 = arith.constant 0 : index
    %c0_10 = arith.constant 0 : index
    %11 = vector.load %arg5[%c0_9, %c0_10] : memref<1x32xf32, #tpu.memory_space<vmem>>, vector<1x32xf32>
    %12 = vector.broadcast %11 : vector<1x32xf32> to vector<8x32xf32>
    %13 = arith.addf %10, %12 : vector<8x32xf32>
    %cst_11 = arith.constant 0.000000e+00 : f32
    %14 = vector.broadcast %cst_11 : f32 to vector<8x32xf32>
    %15 = arith.maximumf %13, %14 : vector<8x32xf32>
    %16 = arith.truncf %15 : vector<8x32xf32> to vector<8x32xbf16>
    %c0_12 = arith.constant 0 : index
    %c0_13 = arith.constant 0 : index
    %17 = vector.load %arg6[%c0_12, %c0_13] : memref<32x32xbf16, #tpu.memory_space<vmem>>, vector<32x32xbf16>
    %cst_14 = arith.constant dense<0.000000e+00> : vector<8x32xf32>
    %18 = tpu.matmul %16, %17, %cst_14 {dimension_numbers = #tpu.dot_dimension_numbers<[1], [0], [0], [1], [0, 0, 1, 1], [], []>} : vector<8x32xbf16>, vector<32x32xbf16>, vector<8x32xf32> -> vector<8x32xf32>
    %c0_15 = arith.constant 0 : index
    %c0_16 = arith.constant 0 : index
    %19 = vector.load %arg7[%c0_15, %c0_16] : memref<1x32xf32, #tpu.memory_space<vmem>>, vector<1x32xf32>
    %20 = vector.broadcast %19 : vector<1x32xf32> to vector<8x32xf32>
    %21 = arith.addf %18, %20 : vector<8x32xf32>
    %cst_17 = arith.constant 0.000000e+00 : f32
    %22 = vector.broadcast %cst_17 : f32 to vector<8x32xf32>
    %23 = arith.maximumf %21, %22 : vector<8x32xf32>
    %24 = arith.truncf %23 : vector<8x32xf32> to vector<8x32xbf16>
    %c0_18 = arith.constant 0 : index
    %c0_19 = arith.constant 0 : index
    %25 = vector.load %arg8[%c0_18, %c0_19] : memref<32x128xbf16, #tpu.memory_space<vmem>>, vector<32x128xbf16>
    %cst_20 = arith.constant dense<0.000000e+00> : vector<8x128xf32>
    %26 = tpu.matmul %24, %25, %cst_20 {dimension_numbers = #tpu.dot_dimension_numbers<[1], [0], [0], [1], [0, 0, 1, 1], [], []>} : vector<8x32xbf16>, vector<32x128xbf16>, vector<8x128xf32> -> vector<8x128xf32>
    %c0_21 = arith.constant 0 : index
    %c0_22 = arith.constant 0 : index
    %27 = vector.load %arg9[%c0_21, %c0_22] : memref<1x128xf32, #tpu.memory_space<vmem>>, vector<1x128xf32>
    %28 = vector.broadcast %27 : vector<1x128xf32> to vector<8x128xf32>
    %29 = arith.addf %26, %28 : vector<8x128xf32>
    %c0_23 = arith.constant 0 : index
    %c0_24 = arith.constant 0 : index
    %30 = vector.load %arg10[%c0_23, %c0_24] : memref<8x128xf32, #tpu.memory_space<vmem>>, vector<8x128xf32>
    tpu.vector_store %arg10[%c0_23, %c0_24], %29 {strides = array<i32>} : memref<8x128xf32, #tpu.memory_space<vmem>>, vector<8x128xf32>,
    return
  }
  func.func @transform_0(%arg0: i32) -> (i32, i32) {
    %c0_i32 = arith.constant 0 : i32
    %c0_i32_0 = arith.constant 0 : i32
    return %arg0, %c0_i32 : i32, i32
  }
  func.func @transform_1(%arg0: i32) -> (i32, i32) {
    %c0_i32 = arith.constant 0 : i32
    %c0_i32_0 = arith.constant 0 : i32
    %c0_i32_1 = arith.constant 0 : i32
    return %c0_i32, %c0_i32_0 : i32, i32
  }
  func.func @transform_2(%arg0: i32) -> (i32, i32) {
    %c0_i32 = arith.constant 0 : i32
    %c0_i32_0 = arith.constant 0 : i32
    %c0_i32_1 = arith.constant 0 : i32
    return %c0_i32, %c0_i32_0 : i32, i32
  }
  func.func @transform_3(%arg0: i32) -> (i32, i32) {
    %c0_i32 = arith.constant 0 : i32
    %c0_i32_0 = arith.constant 0 : i32
    %c0_i32_1 = arith.constant 0 : i32
    return %c0_i32, %c0_i32_0 : i32, i32
  }
  func.func @transform_4(%arg0: i32) -> (i32, i32) {
    %c0_i32 = arith.constant 0 : i32
    %c0_i32_0 = arith.constant 0 : i32
    %c0_i32_1 = arith.constant 0 : i32
    return %c0_i32, %c0_i32_0 : i32, i32
  }
  func.func @transform_5(%arg0: i32) -> (i32, i32) {
    %c0_i32 = arith.constant 0 : i32
    %c0_i32_0 = arith.constant 0 : i32
    %c0_i32_1 = arith.constant 0 : i32
    return %c0_i32, %c0_i32_0 : i32, i32
  }
  func.func @transform_6(%arg0: i32) -> (i32, i32) {
    %c0_i32 = arith.constant 0 : i32
    %c0_i32_0 = arith.constant 0 : i32
    %c0_i32_1 = arith.constant 0 : i32
    return %c0_i32, %c0_i32_0 : i32, i32
  }
  func.func @transform_7(%arg0: i32) -> (i32, i32) {
    %c0_i32 = arith.constant 0 : i32
    %c0_i32_0 = arith.constant 0 : i32
    %c0_i32_1 = arith.constant 0 : i32
    return %c0_i32, %c0_i32_0 : i32, i32
  }
  func.func @transform_8(%arg0: i32) -> (i32, i32) {
    %c0_i32 = arith.constant 0 : i32
    %c0_i32_0 = arith.constant 0 : i32
    %c0_i32_1 = arith.constant 0 : i32
    return %c0_i32, %c0_i32_0 : i32, i32
  }
  func.func @transform_9(%arg0: i32) -> (i32, i32) {
    %c0_i32 = arith.constant 0 : i32
    %c0_i32_0 = arith.constant 0 : i32
    return %arg0, %c0_i32 : i32, i32
  }
}

</mosaic_0001>

<bundles_post_ra>
// kernel: actor_ppo_forward.1
= control target key start
LH: loop header
LB: loop body
LE: loop exit
PB: predicated region body
PF: predicated region fallthrough
CT: control target
= control target key end

     0   :  { %14 = vsyncpa [#allocation3], 0  ;;  %s663_s0 = inlined_call_operand.vmem [shape: bf16[8,16], index: 0, kind: input, shape index: {}]   ;;  %s664_s1 = inlined_call_operand.vmem [shape: bf16[16,32], index: 1, kind: input, shape index: {}]   ;;  %s665_s2 = inlined_call_operand.vmem [shape: f32[1,32], index: 2, kind: input, shape index: {}]   ;;  %s666_s3 = inlined_call_operand.vmem [shape: bf16[32,32], index: 3, kind: input, shape index: {}]   ;;  %s667_s4 = inlined_call_operand.vmem [shape: f32[1,32], index: 4, kind: input, shape index: {}]   ;;  %s668_s5 = inlined_call_operand.hbm [shape: bf16[32,32], index: 5, kind: input, shape index: {}]   ;;  %s669_s6 = inlined_call_operand.hbm [shape: f32[1,32], index: 6, kind: input, shape index: {}]   ;;  %s670_s7 = inlined_call_operand.hbm [shape: bf16[32,128], index: 7, kind: input, shape index: {}]   ;;  %s671_s8 = inlined_call_operand.hbm [shape: f32[1,128], index: 8, kind: input, shape index: {}]   ;;  %s672_s9 = inlined_call_operand.vmem [shape: f32[8,128], index: 9, kind: output, shape index: {}]  }
   0x1   :  { %15 = vsyncpa [#allocation5], 0 }
   0x2   :  { %16 = vsyncpa [#allocation8], 0  ;;  %s522_s30 = smov [#allocation4]   ;;  %s523_s11 = smov [#allocation2]  }
   0x3   :  { %s45_s10 = sshll.u32 %s522_s30, 4  ;;  %s32_s12 = sshll.u32 %s523_s11, 4  ;;  %s46_s10 = int_to_ptr.vmem [resolvable:$true] %s45_s10  ;;  %s580_s12 = int_to_ptr.vmem [resolvable:$true] %s32_s12 }
   0x4   :  { %s428_s15 = scalar_lea.hbm %s669_s6, 16 }
   0x5   :  { %p429_p0 = scmp.ne.s32.totalorder %s669_s6, %s428_s15  ;;  %p432_p1 = scmp.lt.u32.totalorder %s428_s15, %s669_s6 }
   0x7   :  { %p434_p2 = pnand %p432_p1, %p429_p0 }
   0x9   :  { %437 = shalt.err (!%p434_p2)
}
   0xa   :  { %s438_s20 = scalar_lea.vmem %s46_s10, 16  ;;  %s442_s21 = scalar_lea.vmem %s46_s10, 32 }
   0xb   :  { %p439_p3 = scmp.ne.s32.totalorder %s46_s10, %s438_s20  ;;  %p443_p4 = scmp.lt.s32.totalorder %s46_s10, %s46_s10 }
   0xc   :  { %p444_p5 = scmp.lt.s32.totalorder %s442_s21, %s438_s20 }
   0xe   :  { %p445_p6 = por %p444_p5, %p443_p4 }
  0x10   :  { %p446_p7 = pnand %p445_p6, %p439_p3 }
  0x12   :  { %449 = shalt.err (!%p446_p7)
}
  0x13   :  { %48 = dma.hbm_to_vmem [thread:$0]  %s669_s6, 16, %s46_s10, [#allocation5]  }
  0x14   :  { %s450_s26 = scalar_lea.hbm %s668_s5, 256 }
  0x15   :  { %p451_p8 = scmp.ne.s32.totalorder %s668_s5, %s450_s26  ;;  %p454_p9 = scmp.lt.u32.totalorder %s450_s26, %s668_s5 }
  0x17   :  { %p456_p10 = pnand %p454_p9, %p451_p8 }
  0x19   :  { %459 = shalt.err (!%p456_p10)
}
  0x1a   :  { %s460_s11 = scalar_lea.vmem %s580_s12, 256  ;;  %p465_p12 = scmp.lt.s32.totalorder %s580_s12, %s580_s12 }
  0x1b   :  { %p461_p11 = scmp.ne.s32.totalorder %s580_s12, %s460_s11  ;;  %p466_p13 = scmp.lt.s32.totalorder %s460_s11, %s460_s11 }
  0x1d   :  { %p467_p0 = por %p466_p13, %p465_p12 }
  0x1f   :  { %p468_p1 = pnand %p467_p0, %p461_p11 }
  0x21   :  { %471 = shalt.err (!%p468_p1)
}
  0x22   :  { %s524_s6 = smov 64   ;;  %s525_s10 = smov 4  }
  0x23   :  { %38 = dma.hbm_to_vmem [thread:$0]  %s668_s5, 256, %s580_s12, [#allocation3], %s524_s6, %s524_s6, %s525_s10  }
  0x24   :  { %s526_s15 = smov [#allocation6]   ;;  %s527_s17 = smov [#allocation7]  }
  0x25   :  { %s54_s16 = sshll.u32 %s526_s15, 4  ;;  %s67_s18 = sshll.u32 %s527_s17, 4  ;;  %s55_s16 = int_to_ptr.vmem [resolvable:$true] %s54_s16  ;;  %s68_s18 = int_to_ptr.vmem [resolvable:$true] %s67_s18 }
  0x26   :  { %s472_s21 = scalar_lea.hbm %s670_s7, 256 }
  0x27   :  { %p473_p2 = scmp.ne.s32.totalorder %s670_s7, %s472_s21  ;;  %p476_p3 = scmp.lt.u32.totalorder %s472_s21, %s670_s7 }
  0x29   :  { %p478_p4 = pnand %p476_p3, %p473_p2 }
  0x2b   :  { %481 = shalt.err (!%p478_p4)
}
  0x2c   :  { %s482_s5 = scalar_lea.vmem %s55_s16, 256  ;;  %p487_p6 = scmp.lt.s32.totalorder %s55_s16, %s55_s16 }
  0x2d   :  { %p483_p5 = scmp.ne.s32.totalorder %s55_s16, %s482_s5  ;;  %p488_p7 = scmp.lt.s32.totalorder %s482_s5, %s482_s5 }
  0x2f   :  { %p489_p8 = por %p488_p7, %p487_p6 }
  0x31   :  { %p490_p9 = pnand %p489_p8, %p483_p5 }
  0x33   :  { %493 = shalt.err (!%p490_p9)
}
  0x34   :  { %60 = dma.hbm_to_vmem [thread:$0]  %s670_s7, 256, %s55_s16, [#allocation5], %s524_s6, %s524_s6, %s525_s10  }
  0x35   :  { %s494_s29 = scalar_lea.hbm %s671_s8, 16 }
  0x36   :  { %p495_p10 = scmp.ne.s32.totalorder %s671_s8, %s494_s29  ;;  %p498_p11 = scmp.lt.u32.totalorder %s494_s29, %s671_s8 }
  0x38   :  { %p500_p12 = pnand %p498_p11, %p495_p10 }
  0x3a   :  { %503 = shalt.err (!%p500_p12)
}
  0x3b   :  { %s504_s15 = scalar_lea.vmem %s68_s18, 16  ;;  %s508_s17 = scalar_lea.vmem %s68_s18, 32 }
  0x3c   :  { %p505_p13 = scmp.ne.s32.totalorder %s68_s18, %s504_s15  ;;  %p509_p0 = scmp.lt.s32.totalorder %s68_s18, %s68_s18 }
  0x3d   :  { %p510_p1 = scmp.lt.s32.totalorder %s508_s17, %s504_s15 }
  0x3f   :  { %p511_p2 = por %p510_p1, %p509_p0 }
  0x41   :  { %p512_p3 = pnand %p511_p2, %p505_p13 }
  0x43   :  { %515 = shalt.err (!%p512_p3)
}
  0x44   :  { %70 = dma.hbm_to_vmem [thread:$0]  %s671_s8, 16, %s68_s18, [#allocation8]  }
  0x45   :  { %516 = dma.done.wait [#allocation3], 256  }
  0x46   :  { %517 = vsyncadd [#allocation3], 4294967040 }
  0x47   :  { %518 = dma.done.wait [#allocation5], 272  }
  0x48   :  { %519 = vsyncadd [#allocation5], 4294967024 }
  0x49   :  { %520 = dma.done.wait [#allocation8], 16  }
  0x4a   :  { %521 = vsyncadd [#allocation8], 4294967280  ;;  %v528_v0 = vmov 0.0   ;;  %vm529_vm0 = vmmov 0   ;;  %v421_v1 = vld [vmem:[%s664_s1] sm:$0xff]   ;;  %vm100_vm1 = vcmask 130048  }
  0x4b   :  { %383 = vmatprep.subr.bf16.mxu0 %v528_v0  ;;  %385 = vmatprep.mubr.msk.bf16.mxu0 %vm529_vm0, %v528_v0  ;;  %v84_v2 = vld [vmem:[%s663_s0] sm:$0xf]  ;;  %v423_v4 = vld [vmem:[%s666_s3 + $0x8] sm:$0xff]   ;;  %vm169_vm2 = vcmask 261120   ;;  %v426_v15 = vld [vmem:[#allocation6] sm:$0xff]  }
  0x4c   :  { %389 = vmatprep.subr.bf16.mxu1 %v528_v0  ;;  %393 = vmatprep.mubr.msk.bf16.mxu1 %vm529_vm0, %v528_v0  ;;  %v422_v3 = vld [vmem:[%s666_s3] sm:$0xff]   ;;  %v425_v14 = vld [vmem:[#allocation2 + $0x8] sm:$0xff]   ;;  %v364_v25 = vld [vmem:[#allocation4] ss:$0 sm:$0xff] }
  0x4d   :  { %384 = vmatpush3.bf16.msra.mxu0 %v421_v1  ;;  %390 = vmatpush3.bf16.msra.mxu1 %v422_v3  ;;  %v424_v5 = vld [vmem:[#allocation2] sm:$0xff]  }
  0x4e   :  { %397 = vmatprep.subr.bf16.mxu0 %v528_v0  ;;  %391 = vmatprep.subr.bf16.mxu1 %v528_v0  ;;  %v357_v6 = vld [vmem:[%s665_s2] ss:$0 sm:$0xff]  ;;  %v368_v33 = vld [vmem:[#allocation7] ss:$0 sm:$0xff] }
  0x4f   :  { %v360_v16 = vld [vmem:[%s667_s4] ss:$0 sm:$0xff] }
  0x50   :  { %386 = vmatmul.mubr.msk.bf16.vlgmr.msra.gmra.mrb[0].mxu0 %vm100_vm1, %v84_v2  ;;  %v427_v24 = vld [vmem:[#allocation6 + $0x8] sm:$0xff]  }
  0x51   :  { %401 = vmatprep.mubr.msk.bf16.mxu0 %vm529_vm0, %v528_v0  ;;  %392 = vmatpush3.bf16.msra.mxu1 %v423_v4 }
  0x52   :  { %405 = vmatprep.subr.bf16.mxu1 %v528_v0  ;;  %398 = vmatpush3.bf16.msra.mxu0 %v424_v5 }
  0x53   :  { %399 = vmatprep.subr.bf16.mxu0 %v528_v0 }
  0x56   :  { %400 = vmatpush3.bf16.msra.mxu0 %v425_v14 }
 0x123   :  { %v138_v7 = vpop.f32.mrb[0].mxu0 }
 0x124   :  { %v139_v8 = vadd.f32 %v357_v6, %v138_v7  ;;  %v387_v9 = vpop.f32.mrb[1].mxu0 }
 0x125   :  { %v141_v10 = vpop.f32.mrb[2].mxu0 }
 0x126   :  { %v144_v11 = vmax.f32 %v139_v8, 0.0  ;;  %v388_v12 = vpop.f32.mrb[3].mxu0 }
 0x128   :  { %v145_v13 = vpack.c.bf16 %v144_v11, %v144_v11 }
 0x12a   :  { %394 = vmatmul.mubr.msk.bf16.vlgmr.msra.gmra.mrb[0].mxu1 %vm169_vm2, %v145_v13 }
 0x12b   :  { %409 = vmatprep.mubr.msk.bf16.mxu1 %vm529_vm0, %v528_v0  ;;  %406 = vmatpush3.bf16.msra.mxu1 %v426_v15 }
 0x12c   :  { %407 = vmatprep.subr.bf16.mxu1 %v528_v0 }
 0x12f   :  { %408 = vmatpush3.bf16.msra.mxu1 %v427_v24 }
 0x1fd   :  { %v207_v17 = vpop.f32.mrb[0].mxu1 }
 0x1fe   :  { %v208_v18 = vadd.f32 %v360_v16, %v207_v17  ;;  %v395_v19 = vpop.f32.mrb[1].mxu1 }
 0x1ff   :  { %v210_v20 = vpop.f32.mrb[2].mxu1 }
 0x200   :  { %v213_v21 = vmax.f32 %v208_v18, 0.0  ;;  %v396_v22 = vpop.f32.mrb[3].mxu1 }
 0x202   :  { %v214_v23 = vpack.c.bf16 %v213_v21, %v213_v21 }
 0x204   :  { %402 = vmatmul.mubr.msk.bf16.vlgmr.msra.gmra.mrb[4].mxu0 %vm169_vm2, %v214_v23 }
 0x2d7   :  { %v275_v26 = vpop.f32.mrb[4].mxu0 }
 0x2d8   :  { %v276_v27 = vadd.f32 %v364_v25, %v275_v26  ;;  %v403_v28 = vpop.f32.mrb[5].mxu0 }
 0x2d9   :  { %v278_v29 = vpop.f32.mrb[6].mxu0 }
 0x2da   :  { %v281_v30 = vmax.f32 %v276_v27, 0.0  ;;  %v404_v31 = vpop.f32.mrb[7].mxu0 }
 0x2dc   :  { %v282_v32 = vpack.c.bf16 %v281_v30, %v281_v30 }
 0x2de   :  { %410 = vmatmul.mubr.msk.bf16.vlgmr.msra.gmra.mrb[4].mxu1 %vm169_vm2, %v282_v32 }
 0x3b1   :  { %v343_v34 = vpop.f32.mrb[4].mxu1 }
 0x3b2   :  { %v344_v35 = vadd.f32 %v368_v33, %v343_v34  ;;  %v411_v36 = vpop.f32.mrb[5].mxu1 }
 0x3b3   :  { %v346_v37 = vpop.f32.mrb[6].mxu1 }
 0x3b4   :  { %349 = vst [vmem:[%s672_s9] sm:$0xff] %v344_v35  ;;  %v412_v38 = vpop.f32.mrb[7].mxu1 }
 0x3b5   :  { %354 = vsyncpa [#allocation3], 1 }
 0x3b6   :  { %355 = vsyncpa [#allocation5], 1 }
 0x3b7   :  { %356 = vsyncpa [#allocation8], 1 }

</bundles_post_ra>
